<compile_context>
chip_gen: v7x
topology: tpu7x:2x2x1
jax: 0.10.0
libtpu: 0.0.40
codegen_flags: <defaults>
</compile_context>

<pallas_src>
import functools

import jax
import jax.numpy as jnp
from jax.experimental import pallas as pl
from jax.experimental.pallas import tpu as pltpu

INPUT_DIM = 784
HIDDEN = 128
LATENT = 32


def autoencoder_kernel(x_ref,
                       w1_ref, b1_ref,
                       w2_ref, b2_ref,
                       w3_ref, b3_ref,
                       w4_ref, b4_ref,
                       out_ref):
    bf16 = jnp.bfloat16
    # f32 -> bf16 cast on the VPU; reading x as f32 straight from HBM avoids a
    # separate wrapper-side cast/pad pass (the kernel is memory-bound).
    x = x_ref[...].astype(bf16)                                        # (TB, 784)

    # ---- encoder ----
    h = jnp.dot(x, w1_ref[...], preferred_element_type=jnp.float32) + b1_ref[...]
    h = jnp.maximum(h, 0.0)                                            # ReLU, f32
    z = jnp.dot(h.astype(bf16), w2_ref[...],
                preferred_element_type=jnp.float32) + b2_ref[...]      # (TB, 32)

    # ---- decoder ----
    d = jnp.dot(z.astype(bf16), w3_ref[...],
                preferred_element_type=jnp.float32) + b3_ref[...]
    d = jnp.maximum(d, 0.0)
    y = jnp.dot(d.astype(bf16), w4_ref[...],
                preferred_element_type=jnp.float32) + b4_ref[...]      # (TB, 784)

    # sigmoid(y) = 1 / (1 + exp(-y)): one EUP exp + one EUP approx reciprocal
    # (cheaper than jax.nn.sigmoid once HBM traffic is fixed; matters on v7x).
    out_ref[...] = pl.reciprocal(1.0 + jnp.exp(-y), approx=True)


def _round_up(n, m):
    return ((n + m - 1) // m) * m


def _choose_batch_tile(batch, max_tile):
    # Largest sublane-aligned tile <= max_tile that still gives >= 2 grid steps
    # (so dimension_semantics=("parallel",) actually splits work across the two
    # TensorCores on v7x); degrades gracefully to one 8-row tile for tiny B.
    half = _round_up(max(batch // 2, 8), 8)
    return max(8, min(max_tile, half))


def prepare_params(params):
    """One-time conversion (hoisted out of the jitted forward):
    weights -> bf16 MXU operands, biases -> f32."""
    bf16, f32 = jnp.bfloat16, jnp.float32
    return {
        "w1": params["w1"].astype(bf16), "b1": params["b1"].astype(f32),
        "w2": params["w2"].astype(bf16), "b2": params["b2"].astype(f32),
        "w3": params["w3"].astype(bf16), "b3": params["b3"].astype(f32),
        "w4": params["w4"].astype(bf16), "b4": params["b4"].astype(f32),
    }


@functools.partial(jax.jit, static_argnames=("max_batch_tile",))
def autoencoder_forward(x, prepared, max_batch_tile=512):
    """x: (B, 784) float32.  prepared: output of prepare_params()."""
    B, D = x.shape
    assert D == INPUT_DIM
    TB = _choose_batch_tile(B, max_batch_tile)
    Bp = _round_up(B, TB)
    # Batch padding only when B is not a multiple of the tile (no-op otherwise).
    x_in = x if Bp == B else jnp.zeros((Bp, D), x.dtype).at[:B].set(x)

    def resident(shape):
        # Weights/biases: same block for every grid step -> stay VMEM-resident.
        return pl.BlockSpec(shape, lambda i: (0, 0))

    out = pl.pallas_call(
        autoencoder_kernel,
        out_shape=jax.ShapeDtypeStruct((Bp, INPUT_DIM), jnp.float32),
        grid=(Bp // TB,),
        in_specs=[
            pl.BlockSpec((TB, INPUT_DIM), lambda i: (i, 0)),          # x: streamed
            resident((INPUT_DIM, HIDDEN)), resident((1, HIDDEN)),     # w1, b1
            resident((HIDDEN, LATENT)),    resident((1, LATENT)),     # w2, b2
            resident((LATENT, HIDDEN)),    resident((1, HIDDEN)),     # w3, b3
            resident((HIDDEN, INPUT_DIM)), resident((1, INPUT_DIM)),  # w4, b4
        ],
        out_specs=pl.BlockSpec((TB, INPUT_DIM), lambda i: (i, 0)),
        compiler_params=pltpu.CompilerParams(
            dimension_semantics=("parallel",),   # batch tiles across TCs on v7x
        ),
    )(x_in,
      prepared["w1"], prepared["b1"], prepared["w2"], prepared["b2"],
      prepared["w3"], prepared["b3"], prepared["w4"], prepared["b4"])

    return out if Bp == B else out[:B]


def init_params(key, input_dim=INPUT_DIM, latent_dim=LATENT, hidden=HIDDEN):
    """Deterministic init. Weights stored as (in_features, out_features)."""
    def linear(k, fan_in, fan_out):
        kw, kb = jax.random.split(k)
        bound = 1.0 / jnp.sqrt(fan_in)
        w = jax.random.uniform(kw, (fan_in, fan_out), jnp.float32, -bound, bound)
        b = jax.random.uniform(kb, (1, fan_out), jnp.float32, -bound, bound)
        return w, b

    k1, k2, k3, k4 = jax.random.split(key, 4)
    w1, b1 = linear(k1, input_dim, hidden)      # encoder Linear(784, 128)
    w2, b2 = linear(k2, hidden, latent_dim)     # encoder Linear(128, 32)
    w3, b3 = linear(k3, latent_dim, hidden)     # decoder Linear(32, 128)
    w4, b4 = linear(k4, hidden, input_dim)      # decoder Linear(128, 784)
    return {"w1": w1, "b1": b1, "w2": w2, "b2": b2,
            "w3": w3, "b3": b3, "w4": w4, "b4": b4}


def reference_forward_f32(x, p):
    """Pure f32 reference (PyTorch-equivalent math)."""
    h = jnp.maximum(x @ p["w1"] + p["b1"], 0.0)
    z = h @ p["w2"] + p["b2"]
    d = jnp.maximum(z @ p["w3"] + p["b3"], 0.0)
    return jax.nn.sigmoid(d @ p["w4"] + p["b4"])


def reference_forward_bf16(x, p):
    """Reference with the same bf16-operand / f32-accumulate math as the kernel
    (exact sigmoid; the kernel's approx reciprocal adds <~1e-3 abs error)."""
    bf16, f32 = jnp.bfloat16, jnp.float32
    h = jnp.maximum(
        jnp.dot(x.astype(bf16), p["w1"].astype(bf16), preferred_element_type=f32)
        + p["b1"], 0.0)
    z = jnp.dot(h.astype(bf16), p["w2"].astype(bf16),
                preferred_element_type=f32) + p["b2"]
    d = jnp.maximum(
        jnp.dot(z.astype(bf16), p["w3"].astype(bf16), preferred_element_type=f32)
        + p["b3"], 0.0)
    return jax.nn.sigmoid(
        jnp.dot(d.astype(bf16), p["w4"].astype(bf16), preferred_element_type=f32)
        + p["b4"])


if __name__ == "__main__":
    key = jax.random.PRNGKey(0)
    kx, kp = jax.random.split(key)

    B = 64  # small batch -> two 32-row tiles, exercises the grid / pipelining
    x = jax.random.uniform(kx, (B, INPUT_DIM), jnp.float32)  # MNIST-like pixels
    params = init_params(kp, input_dim=INPUT_DIM, latent_dim=LATENT)
    prepared = prepare_params(params)  # one-time weight cast (hoisted out of jit)

    out = autoencoder_forward(x, prepared)
    out = jax.block_until_ready(out)
    assert out.shape == (B, INPUT_DIM)
    assert out.dtype == jnp.float32

    # Tight check against a reference doing identical bf16/f32-accum math
    # (tolerance covers the approximate EUP reciprocal in the sigmoid).
    ref_bf16 = reference_forward_bf16(x, params)
    assert jnp.allclose(out, ref_bf16, atol=5e-3), \
        "mismatch vs bf16-consistent JAX reference"

    # Loose sanity check against the pure-f32 (PyTorch-equivalent) reference:
    # sigmoid output, bf16 weight quantization error is a few 1e-3.
    ref_f32 = reference_forward_f32(x, params)
    assert jnp.allclose(out, ref_f32, atol=3e-2), "mismatch vs f32 JAX reference"

    print("KERNEL_OK")
</pallas_src>

<mosaic_0001>
module attributes {stable_mosaic.version = 11 : i64} {
  func.func @autoencoder_kernel(%arg0: i32, %arg1: memref<32x784xf32, #tpu.memory_space<vmem>>, %arg2: memref<784x128xbf16, #tpu.memory_space<vmem>>, %arg3: memref<1x128xf32, #tpu.memory_space<vmem>>, %arg4: memref<128x32xbf16, #tpu.memory_space<vmem>>, %arg5: memref<1x32xf32, #tpu.memory_space<vmem>>, %arg6: memref<32x128xbf16, #tpu.memory_space<vmem>>, %arg7: memref<1x128xf32, #tpu.memory_space<vmem>>, %arg8: memref<128x784xbf16, #tpu.memory_space<vmem>>, %arg9: memref<1x784xf32, #tpu.memory_space<vmem>>, %arg10: memref<32x784xf32, #tpu.memory_space<vmem>>) attributes {dimension_semantics = [#tpu.dimension_semantics<parallel>], iteration_bounds = array<i64: 2>, scalar_prefetch = 0 : i64, scratch_operands = 0 : i64, tpu.core_type = #tpu.core_type<tc>, window_params = [{transform_indices = @transform_0, window_bounds = array<i64: 32, 784>}, {pipeline_mode = #tpu.pipeline_mode<synchronous>, transform_indices = @transform_1, window_bounds = array<i64: 784, 128>}, {pipeline_mode = #tpu.pipeline_mode<synchronous>, transform_indices = @transform_2, window_bounds = array<i64: 1, 128>}, {pipeline_mode = #tpu.pipeline_mode<synchronous>, transform_indices = @transform_3, window_bounds = array<i64: 128, 32>}, {pipeline_mode = #tpu.pipeline_mode<synchronous>, transform_indices = @transform_4, window_bounds = array<i64: 1, 32>}, {pipeline_mode = #tpu.pipeline_mode<synchronous>, transform_indices = @transform_5, window_bounds = array<i64: 32, 128>}, {pipeline_mode = #tpu.pipeline_mode<synchronous>, transform_indices = @transform_6, window_bounds = array<i64: 1, 128>}, {pipeline_mode = #tpu.pipeline_mode<synchronous>, transform_indices = @transform_7, window_bounds = array<i64: 128, 784>}, {pipeline_mode = #tpu.pipeline_mode<synchronous>, transform_indices = @transform_8, window_bounds = array<i64: 1, 784>}, {transform_indices = @transform_9, window_bounds = array<i64: 32, 784>}]} {
    %c0 = arith.constant 0 : index
    %c0_0 = arith.constant 0 : index
    %0 = vector.load %arg1[%c0, %c0_0] : memref<32x784xf32, #tpu.memory_space<vmem>>, vector<32x784xf32>
    %1 = arith.truncf %0 : vector<32x784xf32> to vector<32x784xbf16>
    %c0_1 = arith.constant 0 : index
    %c0_2 = arith.constant 0 : index
    %2 = vector.load %arg2[%c0_1, %c0_2] : memref<784x128xbf16, #tpu.memory_space<vmem>>, vector<784x128xbf16>
    %cst = arith.constant dense<0.000000e+00> : vector<32x128xf32>
    %3 = tpu.matmul %1, %2, %cst {dimension_numbers = #tpu.dot_dimension_numbers<[1], [0], [0], [1], [0, 0, 1, 1], [], []>} : vector<32x784xbf16>, vector<784x128xbf16>, vector<32x128xf32> -> vector<32x128xf32>
    %c0_3 = arith.constant 0 : index
    %c0_4 = arith.constant 0 : index
    %4 = vector.load %arg3[%c0_3, %c0_4] : memref<1x128xf32, #tpu.memory_space<vmem>>, vector<1x128xf32>
    %5 = vector.broadcast %4 : vector<1x128xf32> to vector<32x128xf32>
    %6 = arith.addf %3, %5 : vector<32x128xf32>
    %cst_5 = arith.constant 0.000000e+00 : f32
    %7 = vector.broadcast %cst_5 : f32 to vector<32x128xf32>
    %8 = arith.maximumf %6, %7 : vector<32x128xf32>
    %9 = arith.truncf %8 : vector<32x128xf32> to vector<32x128xbf16>
    %c0_6 = arith.constant 0 : index
    %c0_7 = arith.constant 0 : index
    %10 = vector.load %arg4[%c0_6, %c0_7] : memref<128x32xbf16, #tpu.memory_space<vmem>>, vector<128x32xbf16>
    %cst_8 = arith.constant dense<0.000000e+00> : vector<32x32xf32>
    %11 = tpu.matmul %9, %10, %cst_8 {dimension_numbers = #tpu.dot_dimension_numbers<[1], [0], [0], [1], [0, 0, 1, 1], [], []>} : vector<32x128xbf16>, vector<128x32xbf16>, vector<32x32xf32> -> vector<32x32xf32>
    %c0_9 = arith.constant 0 : index
    %c0_10 = arith.constant 0 : index
    %12 = vector.load %arg5[%c0_9, %c0_10] : memref<1x32xf32, #tpu.memory_space<vmem>>, vector<1x32xf32>
    %13 = vector.broadcast %12 : vector<1x32xf32> to vector<32x32xf32>
    %14 = arith.addf %11, %13 : vector<32x32xf32>
    %15 = arith.truncf %14 : vector<32x32xf32> to vector<32x32xbf16>
    %c0_11 = arith.constant 0 : index
    %c0_12 = arith.constant 0 : index
    %16 = vector.load %arg6[%c0_11, %c0_12] : memref<32x128xbf16, #tpu.memory_space<vmem>>, vector<32x128xbf16>
    %cst_13 = arith.constant dense<0.000000e+00> : vector<32x128xf32>
    %17 = tpu.matmul %15, %16, %cst_13 {dimension_numbers = #tpu.dot_dimension_numbers<[1], [0], [0], [1], [0, 0, 1, 1], [], []>} : vector<32x32xbf16>, vector<32x128xbf16>, vector<32x128xf32> -> vector<32x128xf32>
    %c0_14 = arith.constant 0 : index
    %c0_15 = arith.constant 0 : index
    %18 = vector.load %arg7[%c0_14, %c0_15] : memref<1x128xf32, #tpu.memory_space<vmem>>, vector<1x128xf32>
    %19 = vector.broadcast %18 : vector<1x128xf32> to vector<32x128xf32>
    %20 = arith.addf %17, %19 : vector<32x128xf32>
    %cst_16 = arith.constant 0.000000e+00 : f32
    %21 = vector.broadcast %cst_16 : f32 to vector<32x128xf32>
    %22 = arith.maximumf %20, %21 : vector<32x128xf32>
    %23 = arith.truncf %22 : vector<32x128xf32> to vector<32x128xbf16>
    %c0_17 = arith.constant 0 : index
    %c0_18 = arith.constant 0 : index
    %24 = vector.load %arg8[%c0_17, %c0_18] : memref<128x784xbf16, #tpu.memory_space<vmem>>, vector<128x784xbf16>
    %cst_19 = arith.constant dense<0.000000e+00> : vector<32x784xf32>
    %25 = tpu.matmul %23, %24, %cst_19 {dimension_numbers = #tpu.dot_dimension_numbers<[1], [0], [0], [1], [0, 0, 1, 1], [], []>} : vector<32x128xbf16>, vector<128x784xbf16>, vector<32x784xf32> -> vector<32x784xf32>
    %c0_20 = arith.constant 0 : index
    %c0_21 = arith.constant 0 : index
    %26 = vector.load %arg9[%c0_20, %c0_21] : memref<1x784xf32, #tpu.memory_space<vmem>>, vector<1x784xf32>
    %27 = vector.broadcast %26 : vector<1x784xf32> to vector<32x784xf32>
    %28 = arith.addf %25, %27 : vector<32x784xf32>
    %cst_22 = arith.constant 0.000000e+00 : f32
    %29 = vector.broadcast %cst_22 : f32 to vector<32x784xf32>
    %30 = arith.subf %29, %28 : vector<32x784xf32>
    %31 = math.exp %30 : vector<32x784xf32>
    %cst_23 = arith.constant 1.000000e+00 : f32
    %32 = vector.broadcast %cst_23 : f32 to vector<32x784xf32>
    %33 = arith.addf %32, %31 : vector<32x784xf32>
    %34 = tpu.reciprocal %33 {approx = true} : vector<32x784xf32> -> vector<32x784xf32>
    %c0_24 = arith.constant 0 : index
    %c0_25 = arith.constant 0 : index
    %35 = vector.load %arg10[%c0_24, %c0_25] : memref<32x784xf32, #tpu.memory_space<vmem>>, vector<32x784xf32>
    tpu.vector_store %arg10[%c0_24, %c0_25], %34 {strides = array<i32>} : memref<32x784xf32, #tpu.memory_space<vmem>>, vector<32x784xf32>,
    return
  }
  func.func @transform_0(%arg0: i32) -> (i32, i32) {
    %c0_i32 = arith.constant 0 : i32
    %c0_i32_0 = arith.constant 0 : i32
    return %arg0, %c0_i32 : i32, i32
  }
  func.func @transform_1(%arg0: i32) -> (i32, i32) {
    %c0_i32 = arith.constant 0 : i32
    %c0_i32_0 = arith.constant 0 : i32
    %c0_i32_1 = arith.constant 0 : i32
    return %c0_i32, %c0_i32_0 : i32, i32
  }
  func.func @transform_2(%arg0: i32) -> (i32, i32) {
    %c0_i32 = arith.constant 0 : i32
    %c0_i32_0 = arith.constant 0 : i32
    %c0_i32_1 = arith.constant 0 : i32
    return %c0_i32, %c0_i32_0 : i32, i32
  }
  func.func @transform_3(%arg0: i32) -> (i32, i32) {
    %c0_i32 = arith.constant 0 : i32
    %c0_i32_0 = arith.constant 0 : i32
    %c0_i32_1 = arith.constant 0 : i32
    return %c0_i32, %c0_i32_0 : i32, i32
  }
  func.func @transform_4(%arg0: i32) -> (i32, i32) {
    %c0_i32 = arith.constant 0 : i32
    %c0_i32_0 = arith.constant 0 : i32
    %c0_i32_1 = arith.constant 0 : i32
    return %c0_i32, %c0_i32_0 : i32, i32
  }
  func.func @transform_5(%arg0: i32) -> (i32, i32) {
    %c0_i32 = arith.constant 0 : i32
    %c0_i32_0 = arith.constant 0 : i32
    %c0_i32_1 = arith.constant 0 : i32
    return %c0_i32, %c0_i32_0 : i32, i32
  }
  func.func @transform_6(%arg0: i32) -> (i32, i32) {
    %c0_i32 = arith.constant 0 : i32
    %c0_i32_0 = arith.constant 0 : i32
    %c0_i32_1 = arith.constant 0 : i32
    return %c0_i32, %c0_i32_0 : i32, i32
  }
  func.func @transform_7(%arg0: i32) -> (i32, i32) {
    %c0_i32 = arith.constant 0 : i32
    %c0_i32_0 = arith.constant 0 : i32
    %c0_i32_1 = arith.constant 0 : i32
    return %c0_i32, %c0_i32_0 : i32, i32
  }
  func.func @transform_8(%arg0: i32) -> (i32, i32) {
    %c0_i32 = arith.constant 0 : i32
    %c0_i32_0 = arith.constant 0 : i32
    %c0_i32_1 = arith.constant 0 : i32
    return %c0_i32, %c0_i32_0 : i32, i32
  }
  func.func @transform_9(%arg0: i32) -> (i32, i32) {
    %c0_i32 = arith.constant 0 : i32
    %c0_i32_0 = arith.constant 0 : i32
    return %arg0, %c0_i32 : i32, i32
  }
}

</mosaic_0001>

<bundles_post_ra>
// kernel: autoencoder_forward.1
= control target key start
LH: loop header
LB: loop body
LE: loop exit
PB: predicated region body
PF: predicated region fallthrough
CT: control target
= control target key end

     0   :  { %14 = vsyncpa [#allocation3], 0  ;;  %s3342_s0 = inlined_call_operand.vmem [shape: f32[64,784], index: 0, kind: input, shape index: {}]   ;;  %s3343_s1 = inlined_call_operand.vmem [shape: bf16[784,128], index: 1, kind: input, shape index: {}]   ;;  %s3344_s2 = inlined_call_operand.vmem [shape: f32[1,128], index: 2, kind: input, shape index: {}]   ;;  %s3345_s3 = inlined_call_operand.vmem [shape: bf16[128,32], index: 3, kind: input, shape index: {}]   ;;  %s3346_s4 = inlined_call_operand.vmem [shape: f32[1,32], index: 4, kind: input, shape index: {}]   ;;  %s3347_s5 = inlined_call_operand.vmem [shape: bf16[32,128], index: 5, kind: input, shape index: {}]   ;;  %s3348_s6 = inlined_call_operand.vmem [shape: f32[1,128], index: 6, kind: input, shape index: {}]   ;;  %s3349_s7 = inlined_call_operand.vmem [shape: bf16[128,784], index: 7, kind: input, shape index: {}]   ;;  %s3350_s8 = inlined_call_operand.vmem [shape: f32[1,784], index: 8, kind: input, shape index: {}]   ;;  %s3351_s9 = inlined_call_operand.hbm [shape: f32[64,784], index: 9, kind: output, shape index: {}]  }
   0x1   :  { %16 = vsyncpa [#allocation3 + $0x1], 0  ;;  %s2749_s30 = smov 0   ;;  %s2751_s10 = smov 0  }
   0x2   :  { %s2753_s11 = smov 0   ;;  %s2755_s12 = smov 0  }
   0x3 LB: > { %s2770_s13 = sadd.s32 4294967295, %s2693_s12   ;;  %s2037_s14 = sadd.s32 4294967294, %s2693_s12   ;;  %s2693_s12 = sphi %s2755_s12, %s3357_s12   ;;  %s2689_s11 = sphi %s2753_s11, %s3356_s11   ;;  %s2685_s10 = sphi %s2751_s10, %s3355_s10   ;;  %s2681_s30 = sphi %s2749_s30, %s3354_s30  }
   0x4   : > { %s2774_s15 = sadd.s32 1, %s2693_s12   ;;  %s223_s16 = sadd.s32 1, %s2689_s11 }
   0x5   : > { %s220_s17 = ssub.s32 %s2693_s12, %s2774_s15  ;;  %p233_p0 = scmp.ne.s32.totalorder %s2689_s11, %s2685_s10 }
   0x6   : > { %p221_p1 = scmp.eq.s32.totalorder %s220_s17, 0  ;;  %p234_p2 = scmp.eq.s32.totalorder %s2770_s13, 1 }
   0x7   : > { %p239_p3 = scmp.ne.s32.totalorder %s2685_s10, %s2681_s30  ;;  %p240_p4 = scmp.eq.s32.totalorder %s2037_s14, 1 }
   0x8   : > { %s2785_s18 = scalar_select %p221_p1, %s2689_s11, %s223_s16  }
   0x9   : > { %p2787_p5 = por %p234_p2, %p233_p0  ;;  %p2791_p6 = por %p240_p4, %p239_p3 }
   0xa   : > { %p2040_p7 = scmp.ge.s32.totalorder %s2693_s12, 1  ;;  %p292_p8 = scmp.lt.s32.totalorder %s2693_s12, 3 }
   0xc   : > { %p293_p9 = pnand %p2040_p7, %p292_p8 }
   0xd   : > { %v2380_v0 = vld [vmem:[%s3343_s1 + $0x40] sm:$0xff] (!%p293_p9)   ;;  %v2384_v4 = vld [vmem:[%s3343_s1 + $0x48] sm:$0xff] (!%p293_p9)   ;;  %v2388_v8 = vld [vmem:[%s3343_s1 + $0x50] sm:$0xff] (!%p293_p9)   ;;  %s2041_s25 = sshll.u32 (!%p293_p9), %s2770_s13, 2  ;;  %vm779_vm0 = vcmask (!%p293_p9), 130048   ;;  %vm1133_vm1 = vcmask (!%p293_p9), 261120  }
   0xe   : > { %296 = sbr.rel (%p293_p9) target bundleno = 1064 (0x428), region = 56  ;;  %v2381_v1 = vld [vmem:[%s3343_s1] sm:$0xff] (!%p293_p9)   ;;  %2170 = vmatprep.subr.bf16.mxu0 (!%p293_p9), %v2380_v0  ;;  %v2385_v5 = vld [vmem:[%s3343_s1 + $0x8] sm:$0xff] (!%p293_p9)   ;;  %v2389_v9 = vld [vmem:[%s3343_s1 + $0x10] sm:$0xff] (!%p293_p9)   ;;  %p330_p10 = scmp.lt.s32.totalorder (!%p293_p9), %s2041_s25, 7 }
   0xf   : > { %v2382_v2 = vld [vmem:[%s3343_s1 + $0xc0] sm:$0xff] (!%p293_p9)   ;;  %2171 = vmatpush3.bf16.msra.mxu0 (!%p293_p9), %v2381_v1  ;;  %v2386_v6 = vld [vmem:[%s3343_s1 + $0xc8] sm:$0xff] (!%p293_p9)   ;;  %v2390_v10 = vld [vmem:[%s3343_s1 + $0xd0] sm:$0xff] (!%p293_p9)   ;;  %s326_s14 = sand.u32 (!%p293_p9), 1, %s2685_s10   ;;  %s2337_s17 = smul.u32 (!%p293_p9), 3584, %s2770_s13 }
  0x10   : > { %v2383_v3 = vld [vmem:[%s3343_s1 + $0x80] sm:$0xff] (!%p293_p9)   ;;  %2198 = vmatprep.subr.bf16.mxu1 (!%p293_p9), %v2382_v2  ;;  %2172 = vmatprep.subr.bf16.mxu0 (!%p293_p9), %v2384_v4  ;;  %v2387_v7 = vld [vmem:[%s3343_s1 + $0x88] sm:$0xff] (!%p293_p9)   ;;  %v2391_v11 = vld [vmem:[%s3343_s1 + $0x90] sm:$0xff] (!%p293_p9)   ;;  %s3301_s27 = scalar_lea.sflag (!%p293_p9), [#allocation3], %s326_s14  ;;  %s2696_s13 = smov (!%p293_p9), [#allocation2]  }
  0x11   : > { %2199 = vmatpush3.bf16.msra.mxu1 (!%p293_p9), %v2383_v3  ;;  %v2392_v12 = vld [vmem:[%s3343_s1 + $0x58] sm:$0xff] (!%p293_p9)   ;;  %v2396_v16 = vld [vmem:[%s3343_s1 + $0x60] sm:$0xff] (!%p293_p9)   ;;  %v2400_v20 = vld [vmem:[%s3343_s1 + $0x68] sm:$0xff] (!%p293_p9)   ;;  %s3295_s23 = scalar_lea.hbm (!%p293_p9), %s3351_s9, %s2337_s17 }
  0x12   : > { %2200 = vmatprep.subr.bf16.mxu1 (!%p293_p9), %v2386_v6  ;;  %v2393_v13 = vld [vmem:[%s3343_s1 + $0x18] sm:$0xff] (!%p293_p9)   ;;  %v2397_v17 = vld [vmem:[%s3343_s1 + $0x20] sm:$0xff] (!%p293_p9)   ;;  %v2401_v21 = vld [vmem:[%s3343_s1 + $0x28] sm:$0xff] (!%p293_p9)  }
  0x13   : > { %2173 = vmatpush3.bf16.msra.mxu0 (!%p293_p9), %v2385_v5  ;;  %v2394_v14 = vld [vmem:[%s3343_s1 + $0xd8] sm:$0xff] (!%p293_p9)   ;;  %v2398_v18 = vld [vmem:[%s3343_s1 + $0xe0] sm:$0xff] (!%p293_p9)   ;;  %v2402_v22 = vld [vmem:[%s3343_s1 + $0xe8] sm:$0xff] (!%p293_p9)  }
  0x14   : > { %2174 = vmatprep.subr.bf16.mxu0 (!%p293_p9), %v2388_v8  ;;  %v2395_v15 = vld [vmem:[%s3343_s1 + $0x98] sm:$0xff] (!%p293_p9)   ;;  %v2399_v19 = vld [vmem:[%s3343_s1 + $0xa0] sm:$0xff] (!%p293_p9)   ;;  %v2403_v23 = vld [vmem:[%s3343_s1 + $0xa8] sm:$0xff] (!%p293_p9)  }
  0x15   : > { %2201 = vmatpush3.bf16.msra.mxu1 %v2387_v7  ;;  %s3359_s25 = smov (!%p330_p10, %s2041_s25), 7  ;;  %v2404_v24 = vld [vmem:[%s3343_s1 + $0x70] sm:$0xff]   ;;  %v2408_v28 = vld [vmem:[%s3343_s1 + $0x78] sm:$0xff]   ;;  %v2412_v38 = vld [vmem:[%s3343_s1 + $0x140] sm:$0xff]  }
  0x16   : > { %2202 = vmatprep.subr.bf16.mxu1 %v2390_v10  ;;  %s2336_s26 = smul.u32 56, %s3359_s25  ;;  %v2405_v25 = vld [vmem:[%s3343_s1 + $0x30] sm:$0xff]   ;;  %v2409_v29 = vld [vmem:[%s3343_s1 + $0x38] sm:$0xff]   ;;  %v2413_v42 = vld [vmem:[%s3343_s1 + $0x100] sm:$0xff]  }
  0x17   : > { %2175 = vmatpush3.bf16.msra.mxu0 %v2389_v9  ;;  %v2406_v26 = vld [vmem:[%s3343_s1 + $0xf0] sm:$0xff]   ;;  %v2410_v30 = vld [vmem:[%s3343_s1 + $0xf8] sm:$0xff]   ;;  %v2414_v46 = vld [vmem:[%s3343_s1 + $0x148] sm:$0xff]  }
  0x18   : > { %2176 = vmatprep.subr.bf16.mxu0 %v2392_v12  ;;  %v2407_v27 = vld [vmem:[%s3343_s1 + $0xb0] sm:$0xff]   ;;  %s2888_s24 = scalar_lea.vmem %s3342_s0, %s2336_s26  ;;  %v2411_v34 = vld [vmem:[%s3343_s1 + $0xb8] sm:$0xff]   ;;  %v2415_v47 = vld [vmem:[%s3343_s1 + $0x108] sm:$0xff]   ;;  %s3235_s26 = smul.u32 224, %s326_s14 }
  0x19   : > { %2203 = vmatpush3.bf16.msra.mxu1 %v2391_v11  ;;  %v339_v31 = vld [vmem:[%s2888_s24 + $0x8] sm:$0xff]  ;;  %v346_v32 = vld [vmem:[%s2888_s24 + $0x40] sm:$0xff]  ;;  %v345_v36 = vld [vmem:[%s2888_s24 + $0x38] sm:$0xff] }
  0x1a   : > { %2204 = vmatprep.subr.bf16.mxu1 %v2394_v14  ;;  %v367_v33 = vpack.c.bf16 %v346_v32, %v339_v31  ;;  %v338_v35 = vld [vmem:[%s2888_s24] sm:$0xff]  ;;  %v341_v39 = vld [vmem:[%s2888_s24 + $0x18] sm:$0xff]  ;;  %v348_v40 = vld [vmem:[%s2888_s24 + $0x50] sm:$0xff]  ;;  %s3248_s16 = scalar_lea.vmem [#allocation2], %s3235_s26 }
  0x1b   : > { %2177 = vmatpush3.bf16.msra.mxu0 %v2393_v13  ;;  %v366_v37 = vpack.c.bf16 %v345_v36, %v338_v35  ;;  %v369_v41 = vpack.c.bf16 %v348_v40, %v341_v39  ;;  %v340_v43 = vld [vmem:[%s2888_s24 + $0x10] sm:$0xff]  ;;  %v347_v44 = vld [vmem:[%s2888_s24 + $0x48] sm:$0xff]  ;;  %v2418_v50 = vld [vmem:[%s3343_s1 + $0x158] sm:$0xff]   ;;  %s1975_s21 = sshll.u32 %s3248_s16, 4  ;;  %s3290_s21 = int_to_ptr.vmem [resolvable:$true] %s1975_s21 }
  0x1c   : > { %2178 = vmatprep.subr.bf16.mxu0 %v2396_v16  ;;  %818 = vmatprep.mubr.bf16.mxu0 %v367_v33  ;;  %v368_v45 = vpack.c.bf16 %v347_v44, %v340_v43  ;;  %v2416_v48 = vld [vmem:[%s3343_s1 + $0x150] sm:$0xff]   ;;  %v2419_v51 = vld [vmem:[%s3343_s1 + $0x118] sm:$0xff]   ;;  %v2420_v54 = vld [vmem:[%s3343_s1 + $0x160] sm:$0xff]   ;;  %s2631_s28 = scalar_lea.vmem %s3290_s21, 3584 }
  0x1d   : > { %2205 = vmatpush3.bf16.msra.mxu1 %v2395_v15  ;;  %867 = vmatprep.mubr.bf16.mxu1 %v369_v41  ;;  %v2417_v49 = vld [vmem:[%s3343_s1 + $0x110] sm:$0xff]   ;;  %v353_v52 = vld [vmem:[%s2888_s24 + $0x78] sm:$0xff]  ;;  %v359_v57 = vld [vmem:[%s2888_s24 + $0xa8] sm:$0xff]  ;;  %p2632_p11 = scmp.ne.s32.totalorder %s3290_s21, %s2631_s28 }
  0x1e   : > { %2206 = vmatprep.subr.bf16.mxu1 %v2398_v18  ;;  %v360_v53 = vld [vmem:[%s2888_s24 + $0xb0] sm:$0xff]  ;;  %v2421_v58 = vld [vmem:[%s3343_s1 + $0x120] sm:$0xff]   ;;  %v355_v60 = vld [vmem:[%s2888_s24 + $0x88] sm:$0xff] }
  0x1f   : > { %2179 = vmatpush3.bf16.msra.mxu0 %v2397_v17  ;;  %v374_v55 = vpack.c.bf16 %v360_v53, %v353_v52  ;;  %v352_v56 = vld [vmem:[%s2888_s24 + $0x70] sm:$0xff]  ;;  %v362_v61 = vld [vmem:[%s2888_s24 + $0xc0] sm:$0xff]  ;;  %v361_v0 = vld [vmem:[%s2888_s24 + $0xb8] sm:$0xff]  ;;  %p2633_p12 = pnand %p2632_p11, %p2787_p5 }
  0x20   : > { %2180 = vmatprep.subr.bf16.mxu0 %v2400_v20  ;;  %v373_v59 = vpack.c.bf16 %v359_v57, %v352_v56  ;;  %v354_v62 = vld [vmem:[%s2888_s24 + $0x80] sm:$0xff]  ;;  %v376_v63 = vpack.c.bf16 %v362_v61, %v355_v60  ;;  %v2422_v1 = vld [vmem:[%s3343_s1 + $0x168] sm:$0xff]   ;;  %v2424_v5 = vld [vmem:[%s3343_s1 + $0x170] sm:$0xff]  }
  0x21   : > { %2207 = vmatpush3.bf16.msra.mxu1 %v2399_v19  ;;  %v375_v2 = vpack.c.bf16 %v361_v0, %v354_v62  ;;  %v2426_v3 = vld [vmem:[%s3343_s1 + $0x180] sm:$0xff]   ;;  %v2423_v4 = vld [vmem:[%s3343_s1 + $0x128] sm:$0xff]   ;;  %v344_v9 = vld [vmem:[%s2888_s24 + $0x30] sm:$0xff]  ;;  %p2634_p13 = pneg %p2633_p12 }
  0x22   : > { %2208 = vmatprep.subr.bf16.mxu1 %v2402_v22  ;;  %v343_v6 = vld [vmem:[%s2888_s24 + $0x28] sm:$0xff]  ;;  %v350_v7 = vld [vmem:[%s2888_s24 + $0x60] sm:$0xff]  ;;  %v365_v12 = vld [vmem:[%s2888_s24 + $0xd8] sm:$0xff] }
  0x23   : > { %2181 = vmatpush3.bf16.msra.mxu0 %v2401_v21  ;;  %v371_v8 = vpack.c.bf16 %v350_v7, %v343_v6  ;;  %v351_v10 = vld [vmem:[%s2888_s24 + $0x68] sm:$0xff]  ;;  %v358_v11 = vld [vmem:[%s2888_s24 + $0xa0] sm:$0xff]  ;;  %v2425_v13 = vld [vmem:[%s3343_s1 + $0x130] sm:$0xff]  }
  0x24   : > { %2182 = vmatprep.subr.bf16.mxu0 %v2404_v24  ;;  %v372_v14 = vpack.c.bf16 %v351_v10, %v344_v9  ;;  %v379_v15 = vpack.c.bf16 %v365_v12, %v358_v11  ;;  %v2427_v16 = vld [vmem:[%s3343_s1 + $0x178] sm:$0xff]   ;;  %v342_v18 = vld [vmem:[%s2888_s24 + $0x20] sm:$0xff]  ;;  %v364_v21 = vld [vmem:[%s2888_s24 + $0xd0] sm:$0xff] }
  0x25   : > { %2209 = vmatpush3.bf16.msra.mxu1 %v2403_v23  ;;  %v2428_v17 = vld [vmem:[%s3343_s1 + $0x138] sm:$0xff]   ;;  %v356_v24 = vld [vmem:[%s2888_s24 + $0x90] sm:$0xff]  ;;  %v2433_v31 = vld [vmem:[%s3345_s3 + $0x20] sm:$0xff]  }
  0x26   : > { %2210 = vmatprep.subr.bf16.mxu1 %v2406_v26  ;;  %v349_v19 = vld [vmem:[%s2888_s24 + $0x58] sm:$0xff]  ;;  %v2434_v32 = vld [vmem:[%s3345_s3 + $0x28] sm:$0xff]   ;;  %v2435_v33 = vld [vmem:[%s3345_s3 + $0x30] sm:$0xff]  }
  0x27   : > { %2183 = vmatpush3.bf16.msra.mxu0 %v2405_v25  ;;  %v357_v20 = vld [vmem:[%s2888_s24 + $0x98] sm:$0xff]  ;;  %v370_v22 = vpack.c.bf16 %v349_v19, %v342_v18  ;;  %v363_v25 = vld [vmem:[%s2888_s24 + $0xc8] sm:$0xff]  ;;  %v2437_v35 = vld [vmem:[%s3347_s5] sm:$0xff]   ;;  %s2635_s24 = sshll.u32 %s2696_s13, 4  ;;  %s2636_s24 = int_to_ptr.vmem [resolvable:$false] %s2635_s24 }
  0x28   : > { %2184 = vmatprep.subr.bf16.mxu0 %v2408_v28  ;;  %v378_v23 = vpack.c.bf16 %v364_v21, %v357_v20  ;;  %v377_v26 = vpack.c.bf16 %v363_v25, %v356_v24  ;;  %v2430_v28 = vld [vmem:[%s3345_s3 + $0x8] sm:$0xff]   ;;  %s2637_s29 = scalar_lea.vmem %s2636_s24, 7168  ;;  %p2638_p0 = scmp.lt.s32.totalorder %s3290_s21, %s2636_s24 }
  0x29   : > { %2211 = vmatpush3.bf16.msra.mxu1 %v2407_v27  ;;  %v2429_v27 = vld [vmem:[%s3345_s3] sm:$0xff]   ;;  %p2639_p1 = scmp.lt.s32.totalorder %s2637_s29, %s2631_s28 }
  0x2a   : > { %2212 = vmatprep.subr.bf16.mxu1 %v2410_v30  ;;  %v2432_v30 = vld [vmem:[%s3345_s3 + $0x18] sm:$0xff]  }
  0x2b   : > { %2185 = vmatpush3.bf16.msra.mxu0 %v2409_v29  ;;  %v2431_v29 = vld [vmem:[%s3345_s3 + $0x10] sm:$0xff]   ;;  %p2640_p2 = por %p2639_p1, %p2638_p0 }
  0x2c   : > { %2226 = vmatprep.subr.bf16.mxu0 %v2412_v38 }
  0x2d   : > { %2213 = vmatpush3.bf16.msra.mxu1 %v2411_v34  ;;  %v2436_v34 = vld [vmem:[%s3345_s3 + $0x38] sm:$0xff]   ;;  %p2641_p3 = pnand %p2640_p2, %p2634_p13 }
  0x2e   : > { %819 = vmatmul.mubr.bf16.vlgmr.msra.gmra.mrb[0].mxu0 %v366_v37  ;;  %2281 = vmatprep.subr.bf16.mxu1 %v2426_v3  ;;  %v2043_v37 = vld [vmem:[%s3344_s2] ss:$0 sm:$0xff] }
  0x2f   : > { %2227 = vmatpush3.bf16.msra.mxu0 %v2413_v42  ;;  %826 = vmatprep.mubr.bf16.mxu0 %v374_v55 }
  0x30   : > { %868 = vmatmul.mubr.bf16.vlgmr.msra.gmra.mrb[0].mxu1 %v368_v45  ;;  %2228 = vmatprep.subr.bf16.mxu0 %v2414_v46 }
  0x31   : > { %875 = vmatprep.mubr.bf16.mxu1 %v376_v63  ;;  %2282 = vmatpush3.bf16.msra.mxu1 %v2426_v3 }
  0x32   : > { %2287 = vmatprep.subr.bf16.mxu1 %v2429_v27 }
  0x33   : > { %2229 = vmatpush3.bf16.msra.mxu0 %v2415_v47 }
  0x34   : > { %2230 = vmatprep.subr.bf16.mxu0 %v2416_v48 }
  0x36   : > { %827 = vmatmul.mubr.bf16.gmra.mrb[4].mxu0 %v373_v59 }
  0x37   : > { %2231 = vmatpush3.bf16.msra.mxu0 %v2417_v49  ;;  %916 = vmatprep.mubr.bf16.mxu0 %v371_v8 }
  0x38   : > { %2232 = vmatprep.subr.bf16.mxu0 %v2418_v50  ;;  %876 = vmatmul.mubr.bf16.gmra.mrb[4].mxu1 %v375_v2 }
  0x39   : > { %2283 = vmatprep.mubr.msk.bf16.mxu1 %vm779_vm0, %v372_v14 }
  0x3b   : > { %2233 = vmatpush3.bf16.msra.mxu0 %v2419_v51 }
  0x3c   : > { %2234 = vmatprep.subr.bf16.mxu0 %v2420_v54 }
  0x3f   : > { %2235 = vmatpush3.bf16.msra.mxu0 %v2421_v58 }
  0x40   : > { %2236 = vmatprep.subr.bf16.mxu0 %v2422_v1  ;;  %2284 = vmatmul.mubr.msk.bf16.vlgmr.msra.gmra.mrb[8].mxu1 %vm779_vm0, %v379_v15 }
  0x41   : > { %2288 = vmatpush3.bf16.msra.mxu1 %v2429_v27 }
  0x42   : > { %2289 = vmatprep.subr.bf16.mxu1 %v2430_v28 }
  0x43   : > { %2237 = vmatpush3.bf16.msra.mxu0 %v2423_v4 }
  0x44   : > { %2238 = vmatprep.subr.bf16.mxu0 %v2424_v5 }
  0x45   : > { %2290 = vmatpush3.bf16.msra.mxu1 %v2430_v28 }
  0x46   : > { %2291 = vmatprep.subr.bf16.mxu1 %v2431_v29 }
  0x47   : > { %2239 = vmatpush3.bf16.msra.mxu0 %v2425_v13 }
  0x48   : > { %2240 = vmatprep.subr.bf16.mxu0 %v2427_v16 }
  0x49   : > { %2292 = vmatpush3.bf16.msra.mxu1 %v2431_v29 }
  0x4a   : > { %2293 = vmatprep.subr.bf16.mxu1 %v2432_v30 }
  0x4b   : > { %2241 = vmatpush3.bf16.msra.mxu0 %v2428_v17 }
  0x4c   : > { %2307 = vmatprep.subr.bf16.mxu0 %v2437_v35 }
  0x4d   : > { %2294 = vmatpush3.bf16.msra.mxu1 %v2432_v30 }
  0x4e   : > { %917 = vmatmul.mubr.bf16.vlgmr.msra.gmra.mrb[8].mxu0 %v370_v22  ;;  %2295 = vmatprep.subr.bf16.mxu1 %v2433_v31 }
  0x4f   : > { %924 = vmatprep.mubr.bf16.mxu0 %v378_v23  ;;  %2308 = vmatpush3.bf16.msra.mxu0 %v2437_v35  ;;  %v2438_v35 = vld [vmem:[%s3347_s5 + $0x8] sm:$0xff]  }
  0x50   : > { %2309 = vmatprep.subr.bf16.mxu0 %v2438_v35 }
  0x51   : > { %2296 = vmatpush3.bf16.msra.mxu1 %v2433_v31 }
  0x52   : > { %2297 = vmatprep.subr.bf16.mxu1 %v2434_v32 }
  0x53   : > { %2310 = vmatpush3.bf16.msra.mxu0 %v2438_v35  ;;  %v2494_v35 = vld [vmem:[%s3349_s7 + $0x50] ss:$28 sps:$4 sm:$0xff]  }
  0x55   : > { %2298 = vmatpush3.bf16.msra.mxu1 %v2434_v32 }
  0x56   : > { %925 = vmatmul.mubr.bf16.gmra.mrb[12].mxu0 %v377_v26  ;;  %2299 = vmatprep.subr.bf16.mxu1 %v2435_v33 }
  0x59   : > { %2300 = vmatpush3.bf16.msra.mxu1 %v2435_v33 }
  0x5a   : > { %2301 = vmatprep.subr.bf16.mxu1 %v2436_v34 }
  0x5d   : > { %2302 = vmatpush3.bf16.msra.mxu1 %v2436_v34 }
 0x101   : > { %v2186_v36 = vpop.f32.mrb[0].mxu0 }
 0x102   : > { %v2187_v38 = vpop.f32.mrb[1].mxu0 }
 0x103   : > { %v2188_v39 = vadd.f32 %v2187_v38, %v2186_v36  ;;  %v2189_v40 = vpop.f32.mrb[2].mxu0  ;;  %v2214_v41 = vpop.f32.mrb[0].mxu1  ;;  %v2441_v36 = vld [vmem:[%s3349_s7 + $0x4] ss:$28 sps:$4 sm:$0xff]   ;;  %v2444_v38 = vld [vmem:[%s3349_s7 + $0xc] ss:$28 sps:$4 sm:$0xff]  }
 0x104   : > { %v2190_v42 = vpop.f32.mrb[3].mxu0  ;;  %v2215_v45 = vpop.f32.mrb[1].mxu1  ;;  %1584 = vmatprep.subr.bf16.mxu0 %v2441_v36  ;;  %1637 = vmatprep.subr.bf16.mxu1 %v2444_v38  ;;  %v2491_v36 = vld [vmem:[%s3349_s7 + $0x48] ss:$28 sps:$4 sm:$0xff]  }
 0x105   : > { %v821_v43 = vadd.f32 %v2188_v39, %v2043_v37  ;;  %v2191_v44 = vadd.f32 %v2190_v42, %v2189_v40  ;;  %v2216_v46 = vadd.f32 %v2215_v45, %v2214_v41  ;;  %v2217_v47 = vpop.f32.mrb[2].mxu1  ;;  %v2450_v39 = vld [vmem:[%s3349_s7 + $0x44] ss:$28 sps:$4 sm:$0xff]   ;;  %v2456_v41 = vld [vmem:[%s3349_s7 + $0x7c] ss:$28 sps:$4 sm:$0xff]  }
 0x106   : > { %v2218_v49 = vpop.f32.mrb[3].mxu1  ;;  %v2448_v40 = vld [vmem:[%s3349_s7 + $0x40] ss:$28 sps:$4 sm:$0xff]   ;;  %v2454_v42 = vld [vmem:[%s3349_s7 + $0x78] ss:$28 sps:$4 sm:$0xff]  }
 0x107   : > { %v824_v48 = vadd.f32 %v2191_v44, %v2043_v37  ;;  %v870_v50 = vadd.f32 %v2216_v46, %v821_v43  ;;  %v2219_v51 = vadd.f32 %v2218_v49, %v2217_v47  ;;  %v2462_v43 = vld [vmem:[%s3349_s7 + $0xb4] ss:$28 sps:$4 sm:$0xff]   ;;  %v2468_v45 = vld [vmem:[%s3349_s7 + $0xec] ss:$28 sps:$4 sm:$0xff]   ;;  %v2474_v47 = vld [vmem:[%s3349_s7 + $0x124] ss:$28 sps:$4 sm:$0xff]  }
 0x108   : > { %v2460_v44 = vld [vmem:[%s3349_s7 + $0xb0] ss:$28 sps:$4 sm:$0xff]   ;;  %v2466_v46 = vld [vmem:[%s3349_s7 + $0xe8] ss:$28 sps:$4 sm:$0xff]  }
 0x109   : > { %v873_v52 = vadd.f32 %v2219_v51, %v824_v48  ;;  %v2192_v53 = vpop.f32.mrb[4].mxu0  ;;  %v2472_v48 = vld [vmem:[%s3349_s7 + $0x120] ss:$28 sps:$4 sm:$0xff]   ;;  %v2498_v38 = vld [vmem:[%s3349_s7 + $0x88] ss:$28 sps:$4 sm:$0xff]  }
 0x10a   : > { %v2193_v54 = vpop.f32.mrb[5].mxu0 }
 0x10b   : > { %v2194_v55 = vadd.f32 %v2193_v54, %v2192_v53  ;;  %v2195_v56 = vpop.f32.mrb[6].mxu0  ;;  %v2220_v57 = vpop.f32.mrb[4].mxu1 }
 0x10c   : > { %v2196_v58 = vpop.f32.mrb[7].mxu0  ;;  %v2221_v59 = vpop.f32.mrb[5].mxu1 }
 0x10d   : > { %v829_v60 = vadd.f32 %v2194_v55, %v2043_v37  ;;  %v2197_v61 = vadd.f32 %v2196_v58, %v2195_v56  ;;  %v2222_v62 = vadd.f32 %v2221_v59, %v2220_v57  ;;  %v2223_v63 = vpop.f32.mrb[6].mxu1 }
 0x10e   : > { %v2224_v0 = vpop.f32.mrb[7].mxu1 }
 0x10f   : > { %v832_v1 = vadd.f32 %v2197_v61, %v2043_v37  ;;  %v878_v2 = vadd.f32 %v2222_v62, %v829_v60  ;;  %v2225_v3 = vadd.f32 %v2224_v0, %v2223_v63  ;;  %v2442_v37 = vld [vmem:[%s3349_s7 + $0x8] ss:$28 sps:$4 sm:$0xff]   ;;  %v2439_v60 = vld [vmem:[%s3349_s7] ss:$28 sps:$4 sm:$0xff]   ;;  %v2445_v62 = vld [vmem:[%s3349_s7 + $0x38] ss:$28 sps:$4 sm:$0xff]  }
 0x110   : > { %v2447_v61 = vld [vmem:[%s3349_s7 + $0x3c] ss:$28 sps:$4 sm:$0xff]   ;;  %v2453_v63 = vld [vmem:[%s3349_s7 + $0x74] ss:$28 sps:$4 sm:$0xff]  }
 0x111   : > { %v881_v4 = vadd.f32 %v2225_v3, %v832_v1  ;;  %v2451_v0 = vld [vmem:[%s3349_s7 + $0x70] ss:$28 sps:$4 sm:$0xff]   ;;  %v2465_v3 = vld [vmem:[%s3349_s7 + $0xe4] ss:$28 sps:$4 sm:$0xff]  }
 0x112   : > { %v2459_v1 = vld [vmem:[%s3349_s7 + $0xac] ss:$28 sps:$4 sm:$0xff]  }
 0x113   : > { %v2285_v5 = vpop.f32.mrb[8].mxu1 }
 0x114   : > { %v967_v6 = vpop.f32.mrb[9].mxu1 }
 0x115   : > { %v2286_v7 = vpop.f32.mrb[10].mxu1 }
 0x116   : > { %v970_v8 = vpop.f32.mrb[11].mxu1 }
 0x121   : > { %v2242_v9 = vpop.f32.mrb[8].mxu0 }
 0x122   : > { %v2243_v10 = vpop.f32.mrb[9].mxu0 }
 0x123   : > { %v2244_v11 = vadd.f32 %v2243_v10, %v2242_v9  ;;  %v2245_v12 = vpop.f32.mrb[10].mxu0  ;;  %v2475_v9 = vld [vmem:[%s3349_s7 + $0x150] ss:$28 sps:$4 sm:$0xff]   ;;  %v2478_v10 = vld [vmem:[%s3349_s7 + $0x158] ss:$28 sps:$4 sm:$0xff]  }
 0x124   : > { %v2246_v13 = vpop.f32.mrb[11].mxu0 }
 0x125   : > { %v2247_v14 = vadd.f32 %v2246_v13, %v2245_v12  ;;  %v919_v15 = vadd.f32 %v2244_v11, %v870_v50  ;;  %v2095_v50 = vld [vmem:[%s3346_s4] ss:$0 sm:$0xff]  ;;  %v2483_v11 = vld [vmem:[%s3349_s7 + $0x18c] ss:$28 sps:$4 sm:$0xff]   ;;  %v2486_v12 = vld [vmem:[%s3349_s7 + $0x194] ss:$28 sps:$4 sm:$0xff]  }
 0x126   : > { %v2481_v13 = vld [vmem:[%s3349_s7 + $0x188] ss:$28 sps:$4 sm:$0xff]  }
 0x127   : > { %v968_v16 = vadd.f32 %v967_v6, %v919_v15  ;;  %v922_v17 = vadd.f32 %v2247_v14, %v873_v52  ;;  %v2469_v6 = vld [vmem:[%s3349_s7 + $0x118] ss:$28 sps:$4 sm:$0xff]   ;;  %v2484_v14 = vld [vmem:[%s3349_s7 + $0x190] ss:$28 sps:$4 sm:$0xff]  }
 0x128   : > { %v2489_v15 = vld [vmem:[%s3349_s7 + $0x14] ss:$28 sps:$4 sm:$0xff]  }
 0x129   : > { %v971_v18 = vadd.f32 %v970_v8, %v922_v17  ;;  %v2248_v19 = vpop.f32.mrb[12].mxu0  ;;  %v982_v21 = vmax.f32 %v968_v16, 0.0  ;;  %v2480_v8 = vld [vmem:[%s3349_s7 + $0x15c] ss:$28 sps:$4 sm:$0xff]   ;;  %v2695_v16 = vmov 0  }
 0x12a   : > { %v2249_v20 = vpop.f32.mrb[13].mxu0  ;;  %v2490_v17 = vld [vmem:[%s3349_s7 + $0x18] ss:$28 sps:$4 sm:$0xff]  }
 0x12b   : > { %v983_v22 = vmax.f32 %v971_v18, 0.0  ;;  %v2250_v23 = vadd.f32 %v2249_v20, %v2248_v19  ;;  %v2251_v24 = vpop.f32.mrb[14].mxu0  ;;  %v2104_v18 = vld [vmem:[%s3348_s6] ss:$0 sm:$0xff] }
 0x12c   : > { %v2252_v25 = vpop.f32.mrb[15].mxu0 }
 0x12d   : > { %v986_v26 = vpack.c.bf16 %v983_v22, %v982_v21  ;;  %v927_v27 = vadd.f32 %v2250_v23, %v878_v2  ;;  %v2253_v28 = vadd.f32 %v2252_v25, %v2251_v24  ;;  %v2457_v2 = vld [vmem:[%s3349_s7 + $0xa8] ss:$28 sps:$4 sm:$0xff]  }
 0x12f   : > { %v976_v29 = vadd.f32 %v2285_v5, %v927_v27  ;;  %v930_v30 = vadd.f32 %v2253_v28, %v881_v4  ;;  %2303 = vmatprep.mubr.bf16.mxu1 %v986_v26  ;;  %v2463_v4 = vld [vmem:[%s3349_s7 + $0xe0] ss:$28 sps:$4 sm:$0xff]  }
 0x130   : > { %v2471_v5 = vld [vmem:[%s3349_s7 + $0x11c] ss:$28 sps:$4 sm:$0xff]  }
 0x131   : > { %v979_v31 = vadd.f32 %v2286_v7, %v930_v30  ;;  %v984_v32 = vmax.f32 %v976_v29, 0.0  ;;  %v2477_v7 = vld [vmem:[%s3349_s7 + $0x154] ss:$28 sps:$4 sm:$0xff]  }
 0x133   : > { %v985_v33 = vmax.f32 %v979_v31, 0.0 }
 0x135   : > { %v987_v34 = vpack.c.bf16 %v985_v33, %v984_v32  ;;  %v2487_v32 = vld [vmem:[%s3349_s7 + $0x10] ss:$28 sps:$4 sm:$0xff]  }
 0x137   : > { %2304 = vmatmul.mubr.bf16.vlgmr.msra.gmra.mrb[12].mxu1 %v987_v34  ;;  %v2493_v34 = vld [vmem:[%s3349_s7 + $0x4c] ss:$28 sps:$4 sm:$0xff]  }
 0x138   : > { %1638 = vmatpush1.bf16.msra.mxu1 %v2442_v37  ;;  %1669 = vmatprep.mubr.bf16.mxu1 %v2695_v16  ;;  %v2497_v37 = vld [vmem:[%s3349_s7 + $0x84] ss:$28 sps:$4 sm:$0xff]  }
 0x139   : > { %1639 = vmatprep.subr.bf16.mxu1 %v2450_v39  ;;  %v2495_v39 = vld [vmem:[%s3349_s7 + $0x80] ss:$28 sps:$4 sm:$0xff]  }
 0x13c   : > { %1640 = vmatpush1.bf16.msra.mxu1 %v2448_v40  ;;  %v2501_v40 = vld [vmem:[%s3349_s7 + $0xbc] ss:$28 sps:$4 sm:$0xff]  }
 0x13d   : > { %1641 = vmatprep.subr.bf16.mxu1 %v2456_v41  ;;  %v2502_v41 = vld [vmem:[%s3349_s7 + $0xc0] ss:$28 sps:$4 sm:$0xff]  }
 0x140   : > { %1642 = vmatpush1.bf16.msra.mxu1 %v2454_v42  ;;  %v2499_v42 = vld [vmem:[%s3349_s7 + $0xb8] ss:$28 sps:$4 sm:$0xff]  }
 0x141   : > { %1643 = vmatprep.subr.bf16.mxu1 %v2462_v43  ;;  %v2505_v43 = vld [vmem:[%s3349_s7 + $0xf4] ss:$28 sps:$4 sm:$0xff]  }
 0x144   : > { %1644 = vmatpush1.bf16.msra.mxu1 %v2460_v44  ;;  %v2506_v44 = vld [vmem:[%s3349_s7 + $0xf8] ss:$28 sps:$4 sm:$0xff]  }
 0x145   : > { %1645 = vmatprep.subr.bf16.mxu1 %v2468_v45  ;;  %v2503_v45 = vld [vmem:[%s3349_s7 + $0xf0] ss:$28 sps:$4 sm:$0xff]  }
 0x148   : > { %1646 = vmatpush1.bf16.msra.mxu1 %v2466_v46  ;;  %v2509_v46 = vld [vmem:[%s3349_s7 + $0x12c] ss:$28 sps:$4 sm:$0xff]  }
 0x149   : > { %1647 = vmatprep.subr.bf16.mxu1 %v2474_v47  ;;  %v2510_v47 = vld [vmem:[%s3349_s7 + $0x130] ss:$28 sps:$4 sm:$0xff]  }
 0x14c   : > { %1648 = vmatpush1.bf16.msra.mxu1 %v2472_v48  ;;  %v2507_v48 = vld [vmem:[%s3349_s7 + $0x128] ss:$28 sps:$4 sm:$0xff]  }
 0x14d   : > { %1649 = vmatprep.subr.bf16.mxu1 %v2480_v8 }
 0x150   : > { %1650 = vmatpush1.bf16.msra.mxu1 %v2478_v10 }
 0x151   : > { %1651 = vmatprep.subr.bf16.mxu1 %v2486_v12 }
 0x154   : > { %1652 = vmatpush1.bf16.msra.mxu1 %v2484_v14 }
 0x155   : > { %2315 = vmatprep.subr.bf16.mxu1 %v2490_v17 }
 0x20a   : > { %v2305_v49 = vpop.f32.mrb[12].mxu1 }
 0x20b   : > { %v1093_v51 = vpop.f32.mrb[13].mxu1  ;;  %v1102_v53 = vadd.f32 %v2305_v49, %v2095_v50  ;;  %v2513_v49 = vld [vmem:[%s3349_s7 + $0x164] ss:$28 sps:$4 sm:$0xff]  }
 0x20c   : > { %v2306_v52 = vpop.f32.mrb[14].mxu1  ;;  %v1094_v56 = vadd.f32 %v2095_v50, %v1093_v51  ;;  %v2511_v51 = vld [vmem:[%s3349_s7 + $0x160] ss:$28 sps:$4 sm:$0xff]  }
 0x20d   : > { %v1105_v54 = vadd.f32 %v2306_v52, %v2095_v50  ;;  %v1096_v55 = vpop.f32.mrb[15].mxu1  ;;  %v2517_v52 = vld [vmem:[%s3349_s7 + $0x19c] ss:$28 sps:$4 sm:$0xff]  }
 0x20e   : > { %v1097_v57 = vadd.f32 %v2095_v50, %v1096_v55  ;;  %v2514_v50 = vld [vmem:[%s3349_s7 + $0x168] ss:$28 sps:$4 sm:$0xff]   ;;  %v1261_v55 = vlaneseq }
 0x20f   : > { %v1109_v58 = vpack.c.bf16 %v1105_v54, %v1102_v53  ;;  %v2518_v53 = vld [vmem:[%s3349_s7 + $0x1a0] ss:$28 sps:$4 sm:$0xff]   ;;  %v2515_v54 = vld [vmem:[%s3349_s7 + $0x198] ss:$28 sps:$4 sm:$0xff]  }
 0x210   : > { %v1108_v59 = vpack.c.bf16 %v1097_v57, %v1094_v56  ;;  %v3199_v56 = vshrl.u32 %v1261_v55, 7 }
 0x212   : > { %2311 = vmatprep.mubr.msk.bf16.mxu0 %vm1133_vm1, %v1108_v59  ;;  %v1263_v57 = vsub.s32 0, %v3199_v56  ;;  %v3206_v59 = vld [vmem:[%s3350_s8] sm:$0x7f] }
 0x213   : > { %2312 = vmatmul.mubr.msk.bf16.vlgmr.msra.gmra.mrb[16].mxu0 %vm1133_vm1, %v1109_v58  ;;  %v1271_v58 = vsub.s32 2, %v3199_v56 }
 0x214   : > { %1585 = vmatpush1.bf16.msra.mxu0 %v2439_v60  ;;  %1616 = vmatprep.mubr.bf16.mxu0 %v2695_v16  ;;  %v1267_v60 = vsub.s32 1, %v3199_v56 }
 0x215   : > { %1586 = vmatprep.subr.bf16.mxu0 %v2447_v61  ;;  %v1275_v61 = vsub.s32 3, %v3199_v56 }
 0x218   : > { %1587 = vmatpush1.bf16.msra.mxu0 %v2445_v62  ;;  %v1264_v62 = vrot.slane %v3206_v59, %v1263_v57 }
 0x219   : > { %1588 = vmatprep.subr.bf16.mxu0 %v2453_v63  ;;  %v3212_v63 = vrot.slane %v3206_v59, %v1271_v58 }
 0x21c   : > { %1589 = vmatpush1.bf16.msra.mxu0 %v2451_v0  ;;  %v3215_v0 = vrot.slane %v3206_v59, %v1267_v60 }
 0x21d   : > { %1590 = vmatprep.subr.bf16.mxu0 %v2459_v1  ;;  %v3218_v1 = vrot.slane %v3206_v59, %v1275_v61 }
 0x220   : > { %1591 = vmatpush1.bf16.msra.mxu0 %v2457_v2 }
 0x221   : > { %1592 = vmatprep.subr.bf16.mxu0 %v2465_v3 }
 0x224   : > { %1593 = vmatpush1.bf16.msra.mxu0 %v2463_v4 }
 0x225   : > { %1594 = vmatprep.subr.bf16.mxu0 %v2471_v5 }
 0x228   : > { %1595 = vmatpush1.bf16.msra.mxu0 %v2469_v6 }
 0x229   : > { %1596 = vmatprep.subr.bf16.mxu0 %v2477_v7 }
 0x22c   : > { %1597 = vmatpush1.bf16.msra.mxu0 %v2475_v9 }
 0x22d   : > { %1598 = vmatprep.subr.bf16.mxu0 %v2483_v11 }
 0x230   : > { %1599 = vmatpush1.bf16.msra.mxu0 %v2481_v13 }
 0x231   : > { %1690 = vmatprep.subr.bf16.mxu0 %v2489_v15 }
 0x2e6   : > { %v2313_v19 = vpop.f32.mrb[16].mxu0 }
 0x2e7   : > { %v1183_v20 = vadd.f32 %v2313_v19, %v2104_v18  ;;  %v1174_v21 = vpop.f32.mrb[17].mxu0 }
 0x2e8   : > { %v1175_v22 = vadd.f32 %v2104_v18, %v1174_v21  ;;  %v2314_v23 = vpop.f32.mrb[18].mxu0 }
 0x2e9   : > { %v1186_v24 = vadd.f32 %v2314_v23, %v2104_v18  ;;  %v1177_v25 = vpop.f32.mrb[19].mxu0  ;;  %v1191_v27 = vmax.f32 %v1183_v20, 0.0 }
 0x2ea   : > { %v1178_v26 = vadd.f32 %v2104_v18, %v1177_v25  ;;  %v1189_v29 = vmax.f32 %v1175_v22, 0.0 }
 0x2eb   : > { %v1192_v28 = vmax.f32 %v1186_v24, 0.0 }
 0x2ec   : > { %v1190_v30 = vmax.f32 %v1178_v26, 0.0 }
 0x2ed   : > { %v3123_v31 = vpack.c.bf16 %v1192_v28, %v1191_v27 }
 0x2ee   : > { %v1193_v33 = vpack.c.bf16 %v1190_v30, %v1189_v29 }
 0x2f0   : > { %1617 = vmatmul.mubr.bf16.vlgmr.msra.gmra.mrb[20].mxu0 %v1193_v33  ;;  %1670 = vmatmul.mubr.bf16.vlgmr.msra.gmra.mrb[16].mxu1 %v1193_v33 }
 0x2f1   : > { %1691 = vmatpush1.bf16.msra.mxu0 %v2487_v32  ;;  %2316 = vmatpush3.bf16.msra.mxu1 %v2490_v17 }
 0x2f2   : > { %1692 = vmatprep.subr.bf16.mxu0 %v2493_v34  ;;  %2317 = vmatprep.subr.bf16.mxu1 %v2494_v35 }
 0x2f3   : > { %1626 = vmatprep.mubr.bf16.mxu0 %v2695_v16  ;;  %1679 = vmatprep.mubr.bf16.mxu1 %v2695_v16 }
 0x2f5   : > { %1693 = vmatpush1.bf16.msra.mxu0 %v2491_v36  ;;  %2318 = vmatpush3.bf16.msra.mxu1 %v2494_v35 }
 0x2f6   : > { %1694 = vmatprep.subr.bf16.mxu0 %v2497_v37  ;;  %2319 = vmatprep.subr.bf16.mxu1 %v2498_v38 }
 0x2f8   : > { %1627 = vmatmul.mubr.bf16.gmra.mrb[24].mxu0 %v3123_v31  ;;  %1680 = vmatmul.mubr.bf16.gmra.mrb[20].mxu1 %v3123_v31 }
 0x2f9   : > { %1695 = vmatpush1.bf16.msra.mxu0 %v2495_v39  ;;  %2320 = vmatpush3.bf16.msra.mxu1 %v2498_v38 }
 0x2fa   : > { %2331 = vmatprep.mubr.bf16.mxu1 %v1193_v33  ;;  %1696 = vmatprep.subr.bf16.mxu0 %v2501_v40 }
 0x2fb   : > { %2321 = vmatprep.subr.bf16.mxu1 %v2502_v41  ;;  %1722 = vmatprep.mubr.bf16.mxu0 %v2695_v16 }
 0x2fd   : > { %1697 = vmatpush1.bf16.msra.mxu0 %v2499_v42  ;;  %2322 = vmatpush3.bf16.msra.mxu1 %v2502_v41 }
 0x2fe   : > { %1698 = vmatprep.subr.bf16.mxu0 %v2505_v43  ;;  %2323 = vmatprep.subr.bf16.mxu1 %v2506_v44 }
 0x301   : > { %1699 = vmatpush1.bf16.msra.mxu0 %v2503_v45  ;;  %2324 = vmatpush3.bf16.msra.mxu1 %v2506_v44 }
 0x302   : > { %1700 = vmatprep.subr.bf16.mxu0 %v2509_v46  ;;  %2325 = vmatprep.subr.bf16.mxu1 %v2510_v47 }
 0x305   : > { %1701 = vmatpush1.bf16.msra.mxu0 %v2507_v48  ;;  %2326 = vmatpush3.bf16.msra.mxu1 %v2510_v47 }
 0x306   : > { %1702 = vmatprep.subr.bf16.mxu0 %v2513_v49  ;;  %2327 = vmatprep.subr.bf16.mxu1 %v2514_v50 }
 0x309   : > { %1703 = vmatpush1.bf16.msra.mxu0 %v2511_v51  ;;  %2328 = vmatpush3.bf16.msra.mxu1 %v2514_v50 }
 0x30a   : > { %1704 = vmatprep.subr.bf16.mxu0 %v2517_v52  ;;  %2329 = vmatprep.subr.bf16.mxu1 %v2518_v53 }
 0x30d   : > { %1705 = vmatpush1.bf16.msra.mxu0 %v2515_v54  ;;  %2330 = vmatpush3.bf16.msra.mxu1 %v2518_v53 }
 0x310   : > { %1723 = vmatmul.mubr.bf16.vlgmr.msra.gmra.mrb[28].mxu0 %v1193_v33  ;;  %2332 = vmatmul.mubr.bf16.vlgmr.msra.gmra.mrb[24].mxu1 %v3123_v31 }
 0x311   : > { %1732 = vmatprep.mubr.bf16.mxu0 %v2695_v16 }
 0x318   : > { %1733 = vmatmul.mubr.bf16.gmra.mrb[32].mxu0 %v3123_v31 }
 0x3c3   : > { %v1618_v2 = vpop.f32.mrb[20].mxu0  ;;  %v1671_v3 = vpop.f32.mrb[16].mxu1 }
 0x3c4   : > { %v1619_v4 = vadd.f32 %v1618_v2, %v1264_v62  ;;  %v1672_v5 = vadd.f32 %v1671_v3, %v3212_v63  ;;  %v1620_v6 = vpop.f32.mrb[21].mxu0  ;;  %v1673_v7 = vpop.f32.mrb[17].mxu1 }
 0x3c5   : > { %v1621_v8 = vadd.f32 %v1620_v6, %v3215_v0  ;;  %v1674_v9 = vadd.f32 %v1673_v7, %v3218_v1  ;;  %v1622_v10 = vpop.f32.mrb[22].mxu0  ;;  %v1675_v11 = vpop.f32.mrb[18].mxu1 }
 0x3c6   : > { %v1792_v12 = vsub.f32 0.0, %v1619_v4  ;;  %v1794_v13 = vsub.f32 0.0, %v1672_v5  ;;  %v1623_v14 = vadd.f32 %v1622_v10, %v1264_v62  ;;  %v1676_v15 = vadd.f32 %v1675_v11, %v3212_v63  ;;  %v1624_v16 = vpop.f32.mrb[23].mxu0  ;;  %v1677_v17 = vpop.f32.mrb[19].mxu1 }
 0x3c7   : > { %v1793_v18 = vsub.f32 0.0, %v1621_v8  ;;  %v1795_v19 = vsub.f32 0.0, %v1674_v9  ;;  %v1625_v20 = vadd.f32 %v1624_v16, %v3215_v0  ;;  %v1678_v21 = vadd.f32 %v1677_v17, %v3218_v1 }
 0x3c8   : > { %v1820_v22 = vmul.f32 1.442695, %v1792_v12  ;;  %v1824_v23 = vmul.f32 1.442695, %v1794_v13  ;;  %v1799_v24 = vsub.f32 0.0, %v1623_v14  ;;  %v1801_v25 = vsub.f32 0.0, %v1676_v15 }
 0x3c9   : > { %v1822_v26 = vmul.f32 1.442695, %v1793_v18  ;;  %v1826_v27 = vmul.f32 1.442695, %v1795_v19  ;;  %v1800_v28 = vsub.f32 0.0, %v1625_v20  ;;  %v1802_v29 = vsub.f32 0.0, %v1678_v21 }
 0x3ca   : > { %2519 = vpow2.f32 %v1820_v22  ;;  %v1834_v30 = vmul.f32 1.442695, %v1799_v24  ;;  %v1838_v31 = vmul.f32 1.442695, %v1801_v25  ;;  %v1279_v16 = vsub.s32 4, %v3199_v56 }
 0x3cb   : > { %2521 = vpow2.f32 %v1824_v23  ;;  %v1628_v32 = vpop.f32.mrb[24].mxu0  ;;  %v1681_v33 = vpop.f32.mrb[20].mxu1  ;;  %v1836_v34 = vmul.f32 1.442695, %v1800_v28  ;;  %v1840_v39 = vmul.f32 1.442695, %v1802_v29 }
 0x3cc   : > { %2523 = vpow2.f32 %v1822_v26  ;;  %v1629_v35 = vadd.f32 %v1628_v32, %v1264_v62  ;;  %v1682_v36 = vadd.f32 %v1681_v33, %v3212_v63  ;;  %v1630_v37 = vpop.f32.mrb[25].mxu0  ;;  %v1683_v38 = vpop.f32.mrb[21].mxu1  ;;  %v1287_v19 = vsub.s32 6, %v3199_v56 }
 0x3cd   : > { %2525 = vpow2.f32 %v1826_v27  ;;  %v1631_v40 = vadd.f32 %v1630_v37, %v3215_v0  ;;  %v1684_v41 = vadd.f32 %v1683_v38, %v3218_v1  ;;  %v1632_v42 = vpop.f32.mrb[26].mxu0  ;;  %v1685_v43 = vpop.f32.mrb[22].mxu1  ;;  %v3241_v27 = vrot.slane %v3206_v59, %v1279_v16 }
 0x3ce   : > { %2527 = vpow2.f32 %v1834_v30  ;;  %v1806_v44 = vsub.f32 0.0, %v1629_v35  ;;  %v1808_v45 = vsub.f32 0.0, %v1682_v36  ;;  %v1633_v46 = vadd.f32 %v1632_v42, %v1264_v62  ;;  %v1634_v47 = vpop.f32.mrb[27].mxu0  ;;  %v1687_v48 = vpop.f32.mrb[23].mxu1 }
 0x3cf   : > { %2529 = vpow2.f32 %v1838_v31  ;;  %v1807_v49 = vsub.f32 0.0, %v1631_v40  ;;  %v1809_v50 = vsub.f32 0.0, %v1684_v41  ;;  %v1686_v7 = vadd.f32 %v1685_v43, %v3212_v63 }
 0x3d0   : > { %2531 = vpow2.f32 %v1836_v34  ;;  %v1848_v51 = vmul.f32 1.442695, %v1806_v44  ;;  %v1852_v52 = vmul.f32 1.442695, %v1808_v45  ;;  %v1813_v53 = vsub.f32 0.0, %v1633_v46 }
 0x3d1   : > { %2533 = vpow2.f32 %v1840_v39  ;;  %v1850_v54 = vmul.f32 1.442695, %v1807_v49  ;;  %v1854_v55 = vmul.f32 1.442695, %v1809_v50  ;;  %v1635_v10 = vadd.f32 %v1634_v47, %v3215_v0 }
 0x3d2   : > { %2535 = vpow2.f32 %v1848_v51  ;;  %v1862_v57 = vmul.f32 1.442695, %v1813_v53  ;;  %v1688_v13 = vadd.f32 %v1687_v48, %v3218_v1  ;;  %v1815_v18 = vsub.f32 0.0, %v1686_v7 }
 0x3d3   : > { %2537 = vpow2.f32 %v1852_v52  ;;  %v1814_v21 = vsub.f32 0.0, %v1635_v10  ;;  %v1283_v1 = vsub.s32 5, %v3199_v56  ;;  %v1288_v31 = vrot.slane %v3206_v59, %v1287_v19 }
 0x3d4   : > { %v2520_v58 = vpop.eup %2519  ;;  %2539 = vpow2.f32 %v1850_v54  ;;  %v1816_v24 = vsub.f32 0.0, %v1688_v13  ;;  %v1866_v30 = vmul.f32 1.442695, %v1815_v18 }
 0x3d5   : > { %v2522_v60 = vpop.eup %2521  ;;  %v1876_v61 = vadd.f32 1.0, %v2520_v58  ;;  %2541 = vpow2.f32 %v1854_v55  ;;  %v1864_v33 = vmul.f32 1.442695, %v1814_v21  ;;  %v3245_v34 = vrot.slane %v3206_v59, %v1283_v1 }
 0x3d6   : > { %v2524_v62 = vpop.eup %2523  ;;  %v1878_v2 = vadd.f32 1.0, %v2522_v60  ;;  %2543 = vpow2.f32 %v1862_v57  ;;  %v1868_v36 = vmul.f32 1.442695, %v1816_v24 }
 0x3d7   : > { %v2526_v3 = vpop.eup %2525  ;;  %2545 = vrcp.f32 %v1876_v61  ;;  %v1877_v4 = vadd.f32 1.0, %v2524_v62 }
 0x3d8   : > { %v2528_v5 = vpop.eup %2527  ;;  %2547 = vrcp.f32 %v1878_v2  ;;  %v1879_v6 = vadd.f32 1.0, %v2526_v3 }
 0x3d9   : > { %v2530_v8 = vpop.eup %2529  ;;  %2549 = vrcp.f32 %v1877_v4  ;;  %v1883_v9 = vadd.f32 1.0, %v2528_v5 }
 0x3da   : > { %v2532_v11 = vpop.eup %2531  ;;  %2551 = vrcp.f32 %v1879_v6  ;;  %v1885_v12 = vadd.f32 1.0, %v2530_v8 }
 0x3db   : > { %v2534_v14 = vpop.eup %2533  ;;  %2553 = vrcp.f32 %v1883_v9  ;;  %v1884_v15 = vadd.f32 1.0, %v2532_v11 }
 0x3dc   : > { %v2536_v17 = vpop.eup %2535  ;;  %2555 = vrcp.f32 %v1885_v12  ;;  %v1886_v63 = vadd.f32 1.0, %v2534_v14 }
 0x3dd   : > { %v2538_v0 = vpop.eup %2537  ;;  %2557 = vrcp.f32 %v1884_v15  ;;  %v1890_v20 = vadd.f32 1.0, %v2536_v17 }
 0x3de   : > { %v2540_v22 = vpop.eup %2539  ;;  %2559 = vrcp.f32 %v1886_v63  ;;  %v1892_v23 = vadd.f32 1.0, %v2538_v0 }
 0x3df   : > { %v2542_v25 = vpop.eup %2541  ;;  %2561 = vrcp.f32 %v1890_v20  ;;  %v1891_v26 = vadd.f32 1.0, %v2540_v22 }
 0x3e0   : > { %v2544_v28 = vpop.eup %2543  ;;  %2563 = vrcp.f32 %v1892_v23  ;;  %v1893_v29 = vadd.f32 1.0, %v2542_v25 }
 0x3e1   : > { %v2546_v32 = vpop.eup %2545  ;;  %2565 = vrcp.f32 %v1891_v26  ;;  %v1897_v56 = vadd.f32 1.0, %v2544_v28 }
 0x3e2   : > { %v2548_v35 = vpop.eup %2547  ;;  %1932 = vst [vmem:[%s3248_s16] sm:$0xff] %v2546_v32  ;;  %2567 = vrcp.f32 %v1893_v29 }
 0x3e3   : > { %v2550_v37 = vpop.eup %2549  ;;  %1934 = vst [vmem:[%s3248_s16 + $0x10] sm:$0xff] %v2548_v35  ;;  %2569 = vrcp.f32 %v1897_v56  ;;  %v1724_v38 = vpop.f32.mrb[28].mxu0 }
 0x3e4   : > { %v2333_v39 = vpop.f32.mrb[24].mxu1  ;;  %v2552_v40 = vpop.eup %2551  ;;  %1933 = vst [vmem:[%s3248_s16 + $0x8] sm:$0xff] %v2550_v37  ;;  %2571 = vpow2.f32 %v1866_v30  ;;  %v1725_v59 = vadd.f32 %v1724_v38, %v3241_v27 }
 0x3e5   : > { %v1786_v41 = vadd.f32 %v2333_v39, %v1288_v31  ;;  %v1726_v42 = vpop.f32.mrb[29].mxu0  ;;  %v1777_v43 = vpop.f32.mrb[25].mxu1  ;;  %1935 = vst [vmem:[%s3248_s16 + $0x18] sm:$0xff] %v2552_v40  ;;  %2573 = vpow2.f32 %v1864_v33 }
 0x3e6   : > { %v2554_v44 = vpop.eup %2553  ;;  %v1727_v45 = vadd.f32 %v1726_v42, %v3245_v34  ;;  %v1778_v46 = vadd.f32 %v1777_v43, %v1288_v31  ;;  %v1728_v47 = vpop.f32.mrb[30].mxu0  ;;  %2575 = vpow2.f32 %v1868_v36  ;;  %v1796_v50 = vsub.f32 0.0, %v1725_v59 }
 0x3e7   : > { %v2334_v48 = vpop.f32.mrb[26].mxu1  ;;  %v2556_v49 = vpop.eup %2555  ;;  %1939 = vst [vmem:[%s3248_s16 + $0x38] sm:$0xff] %v2554_v44  ;;  %v1812_v51 = vsub.f32 0.0, %v1786_v41  ;;  %v1729_v52 = vadd.f32 %v1728_v47, %v3241_v27 }
 0x3e8   : > { %v1730_v53 = vpop.f32.mrb[31].mxu0  ;;  %v1780_v54 = vpop.f32.mrb[27].mxu1  ;;  %1941 = vst [vmem:[%s3248_s16 + $0x48] sm:$0xff] %v2556_v49  ;;  %v1797_v57 = vsub.f32 0.0, %v1727_v45  ;;  %v1798_v58 = vsub.f32 0.0, %v1778_v46  ;;  %v1789_v60 = vadd.f32 %v2334_v48, %v1288_v31 }
 0x3e9   : > { %v2558_v55 = vpop.eup %2557  ;;  %v1731_v61 = vadd.f32 %v1730_v53, %v3245_v34  ;;  %v1828_v2 = vmul.f32 1.442695, %v1796_v50  ;;  %v1860_v3 = vmul.f32 1.442695, %v1812_v51  ;;  %v1803_v4 = vsub.f32 0.0, %v1729_v52 }
 0x3ea   : > { %v2560_v62 = vpop.eup %2559  ;;  %1940 = vst [vmem:[%s3248_s16 + $0x40] sm:$0xff] %v2558_v55  ;;  %v1781_v5 = vadd.f32 %v1780_v54, %v1288_v31  ;;  %v1830_v7 = vmul.f32 1.442695, %v1797_v57  ;;  %v1832_v8 = vmul.f32 1.442695, %v1798_v58  ;;  %v1819_v9 = vsub.f32 0.0, %v1789_v60 }
 0x3eb   : > { %v2562_v6 = vpop.eup %2561  ;;  %1942 = vst [vmem:[%s3248_s16 + $0x50] sm:$0xff] %v2560_v62  ;;  %v1804_v10 = vsub.f32 0.0, %v1731_v61  ;;  %2577 = vpow2.f32 %v1828_v2  ;;  %v1842_v12 = vmul.f32 1.442695, %v1803_v4  ;;  %v1734_v15 = vpop.f32.mrb[32].mxu0 }
 0x3ec   : > { %v2564_v11 = vpop.eup %2563  ;;  %1946 = vst [vmem:[%s3248_s16 + $0x70] sm:$0xff] %v2562_v6  ;;  %2579 = vpow2.f32 %v1860_v3  ;;  %v1874_v14 = vmul.f32 1.442695, %v1819_v9  ;;  %v1805_v63 = vsub.f32 0.0, %v1781_v5  ;;  %v1735_v18 = vadd.f32 %v1734_v15, %v3241_v27  ;;  %v1736_v19 = vpop.f32.mrb[33].mxu0 }
 0x3ed   : > { %v2566_v13 = vpop.eup %2565  ;;  %1948 = vst [vmem:[%s3248_s16 + $0x80] sm:$0xff] %v2564_v11  ;;  %2581 = vpow2.f32 %v1830_v7  ;;  %v1844_v17 = vmul.f32 1.442695, %v1804_v10  ;;  %v1737_v20 = vadd.f32 %v1736_v19, %v3245_v34  ;;  %v1738_v21 = vpop.f32.mrb[34].mxu0 }
 0x3ee   : > { %v2568_v16 = vpop.eup %2567  ;;  %1947 = vst [vmem:[%s3248_s16 + $0x78] sm:$0xff] %v2566_v13  ;;  %2583 = vpow2.f32 %v1832_v8  ;;  %v1810_v22 = vsub.f32 0.0, %v1735_v18  ;;  %v1740_v23 = vpop.f32.mrb[35].mxu0  ;;  %v1846_v30 = vmul.f32 1.442695, %v1805_v63  ;;  %v1739_v33 = vadd.f32 %v1738_v21, %v3241_v27 }
 0x3ef   : > { %v2570_v0 = vpop.eup %2569  ;;  %1949 = vst [vmem:[%s3248_s16 + $0x88] sm:$0xff] %v2568_v16  ;;  %2585 = vpow2.f32 %v1842_v12  ;;  %v1811_v26 = vsub.f32 0.0, %v1737_v20  ;;  %v1741_v35 = vadd.f32 %v1740_v23, %v3245_v34 }
 0x3f0   : > { %v2572_v1 = vpop.eup %2571  ;;  %1953 = vst [vmem:[%s3248_s16 + $0xa8] sm:$0xff] %v2570_v0  ;;  %2587 = vpow2.f32 %v1874_v14  ;;  %v1856_v32 = vmul.f32 1.442695, %v1810_v22  ;;  %v1817_v59 = vsub.f32 0.0, %v1739_v33 }
 0x3f1   : > { %v2574_v24 = vpop.eup %2573  ;;  %v1899_v25 = vadd.f32 1.0, %v2572_v1  ;;  %2589 = vpow2.f32 %v1844_v17  ;;  %v1858_v56 = vmul.f32 1.442695, %v1811_v26  ;;  %v1818_v43 = vsub.f32 0.0, %v1741_v35 }
 0x3f2   : > { %v2576_v28 = vpop.eup %2575  ;;  %v1898_v29 = vadd.f32 1.0, %v2574_v24  ;;  %v1870_v48 = vmul.f32 1.442695, %v1817_v59 }
 0x3f3   : > { %2591 = vrcp.f32 %v1899_v25  ;;  %v1900_v31 = vadd.f32 1.0, %v2576_v28  ;;  %v1872_v51 = vmul.f32 1.442695, %v1818_v43 }
 0x3f4   : > { %2593 = vrcp.f32 %v1898_v29 }
 0x3f5   : > { %2595 = vrcp.f32 %v1900_v31  ;;  %v2578_v36 = vpop.eup %2577 }
 0x3f6   : > { %2597 = vpow2.f32 %v1846_v30  ;;  %v2580_v37 = vpop.eup %2579  ;;  %v1880_v38 = vadd.f32 1.0, %v2578_v36 }
 0x3f7   : > { %2599 = vpow2.f32 %v1856_v32  ;;  %v2582_v39 = vpop.eup %2581  ;;  %v1896_v40 = vadd.f32 1.0, %v2580_v37 }
 0x3f8   : > { %2601 = vpow2.f32 %v1858_v56  ;;  %v2584_v41 = vpop.eup %2583  ;;  %v1881_v42 = vadd.f32 1.0, %v2582_v39 }
 0x3f9   : > { %2603 = vrcp.f32 %v1880_v38  ;;  %v2586_v44 = vpop.eup %2585  ;;  %v1882_v27 = vadd.f32 1.0, %v2584_v41 }
 0x3fa   : > { %2605 = vrcp.f32 %v1896_v40  ;;  %v2588_v45 = vpop.eup %2587  ;;  %v1887_v34 = vadd.f32 1.0, %v2586_v44 }
 0x3fb   : > { %2607 = vrcp.f32 %v1881_v42  ;;  %v2590_v46 = vpop.eup %2589  ;;  %v1903_v47 = vadd.f32 1.0, %v2588_v45 }
 0x3fc   : > { %2609 = vrcp.f32 %v1882_v27  ;;  %v1888_v50 = vadd.f32 1.0, %v2590_v46 }
 0x3fd   : > { %v2592_v49 = vpop.eup %2591  ;;  %2611 = vrcp.f32 %v1887_v34 }
 0x3fe   : > { %v2594_v52 = vpop.eup %2593  ;;  %1955 = vst [vmem:[%s3248_s16 + $0xb8] sm:$0xff] %v2592_v49  ;;  %2613 = vrcp.f32 %v1903_v47 }
 0x3ff   : > { %v2596_v53 = vpop.eup %2595  ;;  %1954 = vst [vmem:[%s3248_s16 + $0xb0] sm:$0xff] %v2594_v52  ;;  %2615 = vrcp.f32 %v1888_v50 }
 0x400   : > { %v2598_v54 = vpop.eup %2597  ;;  %1956 = vst [vmem:[%s3248_s16 + $0xc0] sm:$0xff] %v2596_v53  ;;  %2617 = vpow2.f32 %v1870_v48 }
 0x401   : > { %v2600_v55 = vpop.eup %2599  ;;  %v1889_v57 = vadd.f32 1.0, %v2598_v54  ;;  %2619 = vpow2.f32 %v1872_v51 }
 0x402   : > { %v2602_v58 = vpop.eup %2601  ;;  %v1894_v60 = vadd.f32 1.0, %v2600_v55 }
 0x403   : > { %v2604_v61 = vpop.eup %2603  ;;  %2621 = vrcp.f32 %v1889_v57  ;;  %v1895_v62 = vadd.f32 1.0, %v2602_v58 }
 0x404   : > { %v2606_v2 = vpop.eup %2605  ;;  %1936 = vst [vmem:[%s3248_s16 + $0x20] sm:$0xff] %v2604_v61  ;;  %2623 = vrcp.f32 %v1894_v60 }
 0x405   : > { %v2608_v3 = vpop.eup %2607  ;;  %1952 = vst.msk [vmem:[%s3248_s16 + $0xa0] sm:$0xff] %vm779_vm0, %v2606_v2  ;;  %2625 = vrcp.f32 %v1895_v62 }
 0x406   : > { %v2610_v4 = vpop.eup %2609  ;;  %1937 = vst [vmem:[%s3248_s16 + $0x28] sm:$0xff] %v2608_v3 }
 0x407   : > { %v2612_v5 = vpop.eup %2611  ;;  %1938 = vst.msk [vmem:[%s3248_s16 + $0x30] sm:$0xff] %vm779_vm0, %v2610_v4 }
 0x408   : > { %v2614_v6 = vpop.eup %2613  ;;  %1943 = vst [vmem:[%s3248_s16 + $0x58] sm:$0xff] %v2612_v5 }
 0x409   : > { %v2616_v7 = vpop.eup %2615  ;;  %1959 = vst.msk [vmem:[%s3248_s16 + $0xd8] sm:$0xff] %vm779_vm0, %v2614_v6 }
 0x40a   : > { %v2618_v8 = vpop.eup %2617  ;;  %1944 = vst [vmem:[%s3248_s16 + $0x60] sm:$0xff] %v2616_v7 }
 0x40b   : > { %v2620_v9 = vpop.eup %2619  ;;  %v1901_v10 = vadd.f32 1.0, %v2618_v8 }
 0x40c   : > { %v1902_v11 = vadd.f32 1.0, %v2620_v9 }
 0x40d   : > { %v2622_v12 = vpop.eup %2621  ;;  %2627 = vrcp.f32 %v1901_v10 }
 0x40e   : > { %v2624_v13 = vpop.eup %2623  ;;  %1945 = vst.msk [vmem:[%s3248_s16 + $0x68] sm:$0xff] %vm779_vm0, %v2622_v12  ;;  %2629 = vrcp.f32 %v1902_v11 }
 0x40f   : > { %v2626_v14 = vpop.eup %2625  ;;  %1950 = vst [vmem:[%s3248_s16 + $0x90] sm:$0xff] %v2624_v13 }
 0x410   : > { %1951 = vst [vmem:[%s3248_s16 + $0x98] sm:$0xff] %v2626_v14 }
 0x417   : > { %v2628_v15 = vpop.eup %2627 }
 0x418   : > { %v2630_v16 = vpop.eup %2629  ;;  %1957 = vst [vmem:[%s3248_s16 + $0xc8] sm:$0xff] %v2628_v15 }
 0x419   : > { %1958 = vst [vmem:[%s3248_s16 + $0xd0] sm:$0xff] %v2630_v16 }
 0x41a   : > { %2644 = shalt.err (!%p2641_p3)
}
 0x41b   : > { %s2645_s14 = scalar_lea.hbm %s3295_s23, 3584  ;;  %s2649_s17 = scalar_lea.hbm %s3351_s9, 7168 }
 0x41c   : > { %p2646_p4 = scmp.ne.s32.totalorder %s3295_s23, %s2645_s14  ;;  %p2650_p9 = scmp.lt.u32.totalorder %s3295_s23, %s3351_s9 }
 0x41d   : > { %p2651_p10 = scmp.lt.u32.totalorder %s2649_s17, %s2645_s14  ;;  %p2653_p12 = scmp.lt.u32.totalorder %s2645_s14, %s3295_s23 }
 0x41e   : > { %p2647_p7 = pnand %p2646_p4, %p2787_p5 }
 0x41f   : > { %p2652_p11 = por %p2651_p10, %p2650_p9 }
 0x420   : > { %p2648_p8 = pneg %p2647_p7 }
 0x421   : > { %p2654_p13 = por %p2653_p12, %p2652_p11 }
 0x423   : > { %p2655_p0 = pnand %p2654_p13, %p2648_p8 }
 0x425   : > { %2658 = shalt.err (!%p2655_p0)
}
 0x426   : > { %s2697_s28 = smov 896   ;;  %s2698_s13 = smov 56  }
 0x427   : > { %2338 = dma.vmem_to_hbm [thread:$0]  (%p2787_p5), %s3290_s21, 3584, %s3295_s23, %s3301_s27, %s2697_s28, %s2697_s28, %s2698_s13  }
 0x428 PF: > { %p2344_p1 = scmp.ge.s32.totalorder %s2693_s12, 2  ;;  %s1990_s24 = sand.u32 1, %s2681_s30  }
 0x429   : > { %s1991_s29 = scalar_lea.sflag [#allocation3], %s1990_s24 }
 0x42a   : > { %p2341_p2 = pnand %p2344_p1, %p2791_p6 }
 0x42c   : > { %2676 = dma.done.wait (!%p2341_p2), %s1991_s29, 3584  }
 0x42d   : > { %2678 = vsyncadd (!%p2341_p2), %s1991_s29, 4294963712  ;;  %p19_p3 = scmp.ge.s32.totalorder %s2774_s15, 4   ;;  %s3354_s30 = smov %s2685_s10 }
 0x42e   : > { %s3355_s10 = smov %s2689_s11  ;;  %s3356_s11 = smov %s2785_s18 }
 0x42f   : > { %s3357_s12 = smov %s2774_s15  ;;  %21 = sbr.rel (!%p19_p3) target bundleno = 3 (0x3), region = 91 }
 0x436   :  { %1996 = vsyncpa [#allocation3], 1 }
 0x437   :  { %1998 = vsyncpa [#allocation3 + $0x1], 1 }

</bundles_post_ra>
